<compile_context>
chip_gen: v7x
topology: tpu7x:2x2x1
jax: 0.10.0
libtpu: 0.0.40
codegen_flags: <defaults>
</compile_context>

<pallas_src>
import functools

import jax
import jax.numpy as jnp
from jax.experimental import pallas as pl
from jax.experimental.pallas import tpu as pltpu


def _round_up(x, m):
    return ((x + m - 1) // m) * m


def _soft_ce_kernel(x_ref, t_ref, out_ref, *, total_n, needs_mask):
    """One batch tile: per-row soft cross entropy -> (tb, 1) output block."""
    x = x_ref[...].astype(jnp.float32)      # (tb, C)
    t = t_ref[...].astype(jnp.float32)      # (tb, C)
    tb = x.shape[0]

    # numerically-stable logsumexp along the class (lane) axis
    m = jnp.max(x, axis=1, keepdims=True)                             # (tb, 1)
    lse = jnp.log(jnp.sum(jnp.exp(x - m), axis=1, keepdims=True))     # (tb, 1)

    # sum_C(-t * (x - m - lse)) == sum_C(t) * (m + lse) - sum_C(t * x)
    t_sum = jnp.sum(t, axis=1, keepdims=True)                         # (tb, 1)
    tx_sum = jnp.sum(t * x, axis=1, keepdims=True)                    # (tb, 1)
    per_row = t_sum * (m + lse) - tx_sum                              # (tb, 1)

    if needs_mask:
        # tail tile: rows past N contain unspecified data -> zero their loss
        i = pl.program_id(0)
        rows = jax.lax.broadcasted_iota(jnp.int32, (tb, 1), 0) + i * tb
        per_row = jnp.where(rows < total_n, per_row, jnp.float32(0.0))

    out_ref[...] = per_row


def _pick_batch_tile(n, c, itemsize, vmem_budget_bytes, max_tb=1024):
    granule = 16 if itemsize < 4 else 8          # sublane packing (bf16 vs f32)
    c_pad = _round_up(c, 128)                    # lane padding in VMEM
    per_row_bytes = 2 * 2 * c_pad * itemsize     # 2 inputs x 2 pipeline buffers
    tb = max(granule, min(max_tb, vmem_budget_bytes // per_row_bytes))
    tb = (tb // granule) * granule
    # never bigger than the (granule-rounded-up) batch
    return max(granule, min(tb, _round_up(n, granule)))


def soft_cross_entropy(inputs, target, *, tb=None,
                       vmem_budget_bytes=32 * 1024 * 1024):
    """Pallas TPU implementation of softCrossEntropy.forward.

    inputs: (N, C) logits          (float32 or bfloat16)
    target: (N, C) soft targets    (float32 or bfloat16)
    returns scalar float32:  mean_N( sum_C( -target * log_softmax(inputs, axis=1) ) )
    """
    n, c = inputs.shape
    assert target.shape == (n, c), (inputs.shape, target.shape)

    itemsize = max(jnp.dtype(inputs.dtype).itemsize,
                   jnp.dtype(target.dtype).itemsize)
    if tb is None:
        tb = _pick_batch_tile(n, c, itemsize, vmem_budget_bytes)
    assert tb % 8 == 0, "batch tile must be a multiple of 8 sublanes"

    grid = pl.cdiv(n, tb)
    padded_n = grid * tb
    needs_mask = padded_n != n

    kernel = functools.partial(_soft_ce_kernel, total_n=n, needs_mask=needs_mask)

    c_pad = _round_up(c, 128)
    tile_bytes = 2 * 2 * tb * c_pad * itemsize + 2 * tb * 128 * 4
    vmem_limit = int(min(64 * 1024 * 1024, max(tile_bytes + (8 << 20), 32 << 20)))

    # TODO(synk): for vocab-scale C, add a class-axis grid dim with a streaming
    # (online) logsumexp so tb stays large independent of C.
    per_row_loss = pl.pallas_call(
        kernel,
        out_shape=jax.ShapeDtypeStruct((padded_n, 1), jnp.float32),
        grid_spec=pltpu.PrefetchScalarGridSpec(
            num_scalar_prefetch=0,
            grid=(grid,),
            in_specs=[
                pl.BlockSpec((tb, c), lambda i: (i, 0)),
                pl.BlockSpec((tb, c), lambda i: (i, 0)),
            ],
            out_specs=pl.BlockSpec((tb, 1), lambda i: (i, 0)),
        ),
        compiler_params=pltpu.CompilerParams(
            dimension_semantics=("parallel",),   # no carried state -> megacore OK
            vmem_limit_bytes=vmem_limit,
        ),
    )(inputs, target)

    # padded tail rows contribute zero; divide by the true batch size.
    return jnp.sum(per_row_loss) / jnp.float32(n)


def _reference(inputs, target):
    x = inputs.astype(jnp.float32)
    t = target.astype(jnp.float32)
    return jnp.mean(jnp.sum(-t * jax.nn.log_softmax(x, axis=1), axis=1))


if __name__ == "__main__":
    key = jax.random.PRNGKey(0)
    k1, k2, k3, k4, k5, k6 = jax.random.split(key, 6)

    # 1) small f32 case, auto tile size (matches the module's (N, C) usage)
    N, C = 16, 32
    logits = jax.random.normal(k1, (N, C), dtype=jnp.float32)
    target = jax.nn.softmax(jax.random.normal(k2, (N, C), dtype=jnp.float32), axis=1)
    loss = jax.block_until_ready(soft_cross_entropy(logits, target))
    ref = _reference(logits, target)
    assert jnp.allclose(loss, ref, rtol=1e-5, atol=1e-5), (loss, ref)

    # 2) ragged batch (N not a multiple of tb) exercises the masked tail tile
    N, C = 50, 160
    logits = jax.random.normal(k3, (N, C), dtype=jnp.float32)
    target = jax.nn.softmax(jax.random.normal(k4, (N, C), dtype=jnp.float32), axis=1)
    loss = jax.block_until_ready(soft_cross_entropy(logits, target, tb=16))
    ref = _reference(logits, target)
    assert jnp.allclose(loss, ref, rtol=1e-5, atol=1e-5), (loss, ref)

    # 3) bf16 inputs (halved HBM traffic), f32 compute in-kernel
    N, C = 48, 256
    logits = jax.random.normal(k5, (N, C), dtype=jnp.float32).astype(jnp.bfloat16)
    target = jax.nn.softmax(
        jax.random.normal(k6, (N, C), dtype=jnp.float32), axis=1
    ).astype(jnp.bfloat16)
    loss = jax.block_until_ready(soft_cross_entropy(logits, target, tb=16))
    ref = _reference(logits, target)
    assert jnp.allclose(loss, ref, rtol=1e-4, atol=1e-4), (loss, ref)

    print("KERNEL_OK")
</pallas_src>

<mosaic_0001>
module attributes {stable_mosaic.version = 11 : i64} {
  func.func @_soft_ce_kernel(%arg0: i32, %arg1: memref<16x32xf32, #tpu.memory_space<vmem>>, %arg2: memref<16x32xf32, #tpu.memory_space<vmem>>, %arg3: memref<16x1xf32, #tpu.memory_space<vmem>>) attributes {dimension_semantics = [#tpu.dimension_semantics<parallel>], iteration_bounds = array<i64: 1>, scalar_prefetch = 0 : i64, scratch_operands = 0 : i64, tpu.core_type = #tpu.core_type<tc>, window_params = [{transform_indices = @transform_0, window_bounds = array<i64: 16, 32>}, {transform_indices = @transform_1, window_bounds = array<i64: 16, 32>}, {transform_indices = @transform_2, window_bounds = array<i64: 16, 1>}]} {
    %c0 = arith.constant 0 : index
    %c0_0 = arith.constant 0 : index
    %0 = vector.load %arg1[%c0, %c0_0] : memref<16x32xf32, #tpu.memory_space<vmem>>, vector<16x32xf32>
    %c0_1 = arith.constant 0 : index
    %c0_2 = arith.constant 0 : index
    %1 = vector.load %arg2[%c0_1, %c0_2] : memref<16x32xf32, #tpu.memory_space<vmem>>, vector<16x32xf32>
    %cst = arith.constant dense<0xFF800000> : vector<16xf32>
    %2 = vector.multi_reduction <maximumf>, %0, %cst [1] : vector<16x32xf32> to vector<16xf32>
    %3 = vector.shape_cast %2 : vector<16xf32> to vector<16x1xf32>
    %4 = vector.broadcast %3 : vector<16x1xf32> to vector<16x32xf32>
    %5 = arith.subf %0, %4 : vector<16x32xf32>
    %6 = math.exp %5 : vector<16x32xf32>
    %cst_3 = arith.constant dense<0.000000e+00> : vector<16xf32>
    %7 = vector.multi_reduction <add>, %6, %cst_3 [1] : vector<16x32xf32> to vector<16xf32>
    %8 = vector.shape_cast %7 : vector<16xf32> to vector<16x1xf32>
    %9 = math.log %8 : vector<16x1xf32>
    %cst_4 = arith.constant dense<0.000000e+00> : vector<16xf32>
    %10 = vector.multi_reduction <add>, %1, %cst_4 [1] : vector<16x32xf32> to vector<16xf32>
    %11 = vector.shape_cast %10 : vector<16xf32> to vector<16x1xf32>
    %12 = arith.mulf %1, %0 : vector<16x32xf32>
    %cst_5 = arith.constant dense<0.000000e+00> : vector<16xf32>
    %13 = vector.multi_reduction <add>, %12, %cst_5 [1] : vector<16x32xf32> to vector<16xf32>
    %14 = vector.shape_cast %13 : vector<16xf32> to vector<16x1xf32>
    %15 = arith.addf %3, %9 : vector<16x1xf32>
    %16 = arith.mulf %11, %15 : vector<16x1xf32>
    %17 = arith.subf %16, %14 : vector<16x1xf32>
    %c0_6 = arith.constant 0 : index
    %c0_7 = arith.constant 0 : index
    %18 = vector.load %arg3[%c0_6, %c0_7] : memref<16x1xf32, #tpu.memory_space<vmem>>, vector<16x1xf32>
    tpu.vector_store %arg3[%c0_6, %c0_7], %17 {strides = array<i32>} : memref<16x1xf32, #tpu.memory_space<vmem>>, vector<16x1xf32>,
    return
  }
  func.func @transform_0(%arg0: i32) -> (i32, i32) {
    %c0_i32 = arith.constant 0 : i32
    %c0_i32_0 = arith.constant 0 : i32
    return %arg0, %c0_i32 : i32, i32
  }
  func.func @transform_1(%arg0: i32) -> (i32, i32) {
    %c0_i32 = arith.constant 0 : i32
    %c0_i32_0 = arith.constant 0 : i32
    return %arg0, %c0_i32 : i32, i32
  }
  func.func @transform_2(%arg0: i32) -> (i32, i32) {
    %c0_i32 = arith.constant 0 : i32
    %c0_i32_0 = arith.constant 0 : i32
    return %arg0, %c0_i32 : i32, i32
  }
}

</mosaic_0001>

<bundles_post_ra>
// kernel: tpu_custom_call.1
= control target key start
LH: loop header
LB: loop body
LE: loop exit
PB: predicated region body
PF: predicated region fallthrough
CT: control target
= control target key end

     0   :  { %7 = vsyncpa [#allocation3], 0  ;;  %s212_s0 = inlined_call_operand.hbm [shape: f32[16,32], index: 0, kind: input, shape index: {}]   ;;  %s213_s1 = inlined_call_operand.hbm [shape: f32[16,32], index: 1, kind: input, shape index: {}]   ;;  %s214_s2 = inlined_call_operand.vmem [shape: f32[16,1], index: 2, kind: output, shape index: {}]  }
   0x1   :  { %8 = vsyncpa [#allocation5], 0  ;;  %s155_s9 = smov [#allocation2]   ;;  %s107_s13 = scalar_lea.hbm %s212_s0, 256 }
   0x2   :  { %s14_s10 = sshll.u32 %s155_s9, 4  ;;  %p108_p0 = scmp.ne.s32.totalorder %s212_s0, %s107_s13  ;;  %s15_s10 = int_to_ptr.vmem [resolvable:$true] %s14_s10 }
   0x3   :  { %p111_p1 = scmp.lt.u32.totalorder %s107_s13, %s212_s0 }
   0x5   :  { %p113_p2 = pnand %p111_p1, %p108_p0 }
   0x7   :  { %116 = shalt.err (!%p113_p2)
}
   0x8   :  { %s117_s18 = scalar_lea.vmem %s15_s10, 256  ;;  %p122_p4 = scmp.lt.s32.totalorder %s15_s10, %s15_s10 }
   0x9   :  { %p118_p3 = scmp.ne.s32.totalorder %s15_s10, %s117_s18  ;;  %p123_p5 = scmp.lt.s32.totalorder %s117_s18, %s117_s18 }
   0xb   :  { %p124_p6 = por %p123_p5, %p122_p4 }
   0xd   :  { %p125_p7 = pnand %p124_p6, %p118_p3 }
   0xf   :  { %128 = shalt.err (!%p125_p7)
}
  0x10   :  { %s156_s19 = smov 128   ;;  %s157_s20 = smov 8  }
  0x11   :  { %20 = dma.hbm_to_vmem [thread:$0]  %s212_s0, 256, %s15_s10, [#allocation3], %s156_s19, %s156_s19, %s157_s20  }
  0x12   :  { %s158_s23 = smov [#allocation4]   ;;  %s129_s27 = scalar_lea.hbm %s213_s1, 256 }
  0x13   :  { %s26_s24 = sshll.u32 %s158_s23, 4  ;;  %p130_p8 = scmp.ne.s32.totalorder %s213_s1, %s129_s27  ;;  %s27_s24 = int_to_ptr.vmem [resolvable:$true] %s26_s24 }
  0x14   :  { %p133_p9 = scmp.lt.u32.totalorder %s129_s27, %s213_s1 }
  0x16   :  { %p135_p10 = pnand %p133_p9, %p130_p8 }
  0x18   :  { %138 = shalt.err (!%p135_p10)
}
  0x19   :  { %s139_s4 = scalar_lea.vmem %s27_s24, 256  ;;  %p144_p12 = scmp.lt.s32.totalorder %s27_s24, %s27_s24 }
  0x1a   :  { %p140_p11 = scmp.ne.s32.totalorder %s27_s24, %s139_s4  ;;  %p145_p13 = scmp.lt.s32.totalorder %s139_s4, %s139_s4 }
  0x1c   :  { %p146_p0 = por %p145_p13, %p144_p12 }
  0x1e   :  { %p147_p1 = pnand %p146_p0, %p140_p11 }
  0x20   :  { %150 = shalt.err (!%p147_p1)
}
  0x21   :  { %32 = dma.hbm_to_vmem [thread:$0]  %s213_s1, 256, %s27_s24, [#allocation5], %s156_s19, %s156_s19, %s157_s20  }
  0x22   :  { %151 = dma.done.wait [#allocation3], 256  }
  0x23   :  { %152 = vsyncadd [#allocation3], 4294967040 }
  0x24   :  { %153 = dma.done.wait [#allocation5], 256  }
  0x25   :  { %154 = vsyncadd [#allocation5], 4294967040  ;;  %vm43_vm0 = vcmask 261120   ;;  %v39_v0 = vld [vmem:[#allocation2] sm:$0xff]  ;;  %v40_v1 = vld [vmem:[#allocation2 + $0x8] sm:$0xff]  ;;  %vm86_vm1 = vcmask 7168  }
  0x26   :  { %v44_v2 = vsel %vm43_vm0, %v39_v0, -inf  ;;  %v47_v3 = vsel %vm43_vm0, %v40_v1, -inf  ;;  %v41_v4 = vld [vmem:[#allocation4] sm:$0xff]  ;;  %v42_v17 = vld [vmem:[#allocation4 + $0x8] sm:$0xff] }
  0x27   :  { %45 = vmax.xlane.f32.xlu0 %v44_v2  ;;  %v66_v5 = vsel %vm43_vm0, %v41_v4, 0.0  ;;  %v72_v6 = vmul.f32 %v41_v4, %v39_v0  ;;  %v69_v19 = vsel %vm43_vm0, %v42_v17, 0.0  ;;  %v73_v20 = vmul.f32 %v42_v17, %v40_v1 }
  0x29   :  { %v74_v7 = vsel %vm43_vm0, %v72_v6, 0.0  ;;  %v77_v21 = vsel %vm43_vm0, %v73_v20, 0.0 }
  0x2b   :  { %48 = vmax.xlane.f32.xlu0 %v47_v3 }
  0x2f   :  { %67 = vadd.xlane.f32.xlu0 %v66_v5 }
  0x33   :  { %75 = vadd.xlane.f32.xlu0 %v74_v7 }
  0xb4   :  { %v46_v8 = vpop.xlane.xlu0 %45 }
  0xb5   :  { %v50_v9 = vsub.f32 %v39_v0, %v46_v8 }
  0xb7   :  { %v52_v10 = vmul.f32 1.442695, %v50_v9 }
  0xb8   :  { %v49_v11 = vpop.xlane.xlu0 %48 }
  0xb9   :  { %99 = vpow2.f32 %v52_v10  ;;  %v51_v12 = vsub.f32 %v40_v1, %v49_v11 }
  0xbb   :  { %v54_v13 = vmul.f32 1.442695, %v51_v12 }
  0xbc   :  { %v68_v24 = vpop.xlane.xlu0 %67 }
  0xbd   :  { %101 = vpow2.f32 %v54_v13 }
  0xc0   :  { %v76_v30 = vpop.xlane.xlu0 %75 }
  0xc3   :  { %v100_v14 = vpop.eup %99 }
  0xc4   :  { %v56_v15 = vsel %vm43_vm0, %v100_v14, 0.0 }
  0xc5   :  { %57 = vadd.xlane.f32.xlu1 %v56_v15 }
  0xc7   :  { %v102_v16 = vpop.eup %101 }
  0xc8   :  { %v59_v18 = vsel %vm43_vm0, %v102_v16, 0.0 }
  0xc9   :  { %60 = vadd.xlane.f32.xlu1 %v59_v18 }
  0xcd   :  { %70 = vadd.xlane.f32.xlu1 %v69_v19 }
  0xd1   :  { %78 = vadd.xlane.f32.xlu1 %v77_v21 }
 0x152   :  { %v58_v22 = vpop.xlane.xlu1 %57 }
 0x153   :  { %103 = vlog2.f32 %v58_v22 }
 0x156   :  { %v61_v23 = vpop.xlane.xlu1 %60 }
 0x157   :  { %105 = vlog2.f32 %v61_v23 }
 0x15a   :  { %v71_v27 = vpop.xlane.xlu1 %70 }
 0x15d   :  { %v104_v25 = vpop.eup %103 }
 0x15e   :  { %v63_v26 = vmul.f32 0.6931472, %v104_v25  ;;  %v79_v35 = vpop.xlane.xlu1 %78 }
 0x160   :  { %v80_v28 = vadd.f32 %v63_v26, %v46_v8 }
 0x161   :  { %v106_v29 = vpop.eup %105 }
 0x162   :  { %v65_v31 = vmul.f32 0.6931472, %v106_v29  ;;  %v82_v32 = vmul.f32 %v80_v28, %v68_v24 }
 0x164   :  { %v81_v33 = vadd.f32 %v65_v31, %v49_v11  ;;  %v84_v34 = vsub.f32 %v82_v32, %v76_v30 }
 0x166   :  { %v83_v36 = vmul.f32 %v81_v33, %v71_v27  ;;  %87 = vst.msk [vmem:[%s214_s2] sm:$0xff] %vm86_vm1, %v84_v34 }
 0x168   :  { %v85_v37 = vsub.f32 %v83_v36, %v79_v35 }
 0x16a   :  { %88 = vst.msk [vmem:[%s214_s2 + $0x8] sm:$0xff] %vm86_vm1, %v85_v37 }
 0x16b   :  { %93 = vsyncpa [#allocation3], 1 }
 0x16c   :  { %94 = vsyncpa [#allocation5], 1 }

</bundles_post_ra>
